<compile_context>
chip_gen: v7x
topology: tpu7x:2x2x1
jax: 0.10.0
libtpu: 0.0.40
codegen_flags: <defaults>
</compile_context>

<pallas_src>
import jax
import jax.numpy as jnp
from jax import lax
from jax.experimental import pallas as pl
from jax.experimental.pallas import tpu as pltpu


def _make_resnet_block_kernel(Bblk, L, out_dim, K, pad, has_proj):
    """Builds the kernel body. `has_proj` == (in_dim != out_dim)."""

    def layer_norm(h, g_ref, b_ref, eps=1e-5):
        # h: (Bblk*L, C); reduce over the channel (lane) axis, stats in f32.
        mu = jnp.mean(h, axis=-1, keepdims=True)
        var = jnp.mean((h - mu) ** 2, axis=-1, keepdims=True)
        return (h - mu) * lax.rsqrt(var + eps) * g_ref[0][None, :] + b_ref[0][None, :]

    def conv_fused(h3d, w_ref, b_ref):
        # h3d: (Bblk, L, Cin) unpadded activations. Zero-pad the length axis in
        # registers, gather the K taps into a single im2col slab along the
        # channel axis, then do one MXU matmul against the (K*Cin, Cout) weight.
        cin = h3d.shape[-1]
        z = jnp.zeros((Bblk, pad, cin), jnp.float32)
        hp = jnp.concatenate([z, h3d, z], axis=1)                    # (Bblk, L+2p, Cin)
        slab = jnp.concatenate([hp[:, k:k + L, :] for k in range(K)], axis=-1)
        slab = slab.reshape(Bblk * L, K * cin)                       # im2col
        return (jnp.dot(slab, w_ref[...], preferred_element_type=jnp.float32)
                + b_ref[0][None, :])                                 # (Bblk*L, Cout)

    def kernel(*refs):
        if has_proj:
            (x_ref, w1, b1, g1, be1,
             w2, b2, g2, be2,
             w3, b3, g3, be3, o_ref) = refs
        else:
            (x_ref, w2, b2, g2, be2,
             w3, b3, g3, be3, o_ref) = refs

        x3 = x_ref[...]                                              # (Bblk, L, Cin)
        if has_proj:
            h = layer_norm(conv_fused(x3, w1, b1), g1, be1)          # CNN1 + LN1
        else:
            h = x3.reshape(Bblk * L, out_dim)
        res = h

        h2 = conv_fused(h.reshape(Bblk, L, out_dim), w2, b2)         # CNN2
        h2 = jnp.maximum(layer_norm(h2, g2, be2), 0.0)               # LN2 + ReLU

        h3 = conv_fused(h2.reshape(Bblk, L, out_dim), w3, b3)        # CNN3
        h3 = layer_norm(h3, g3, be3) + res                           # LN3 + residual
        o_ref[...] = jnp.maximum(h3, 0.0).reshape(Bblk, L, out_dim)  # ReLU

    return kernel


def resnet_block_pallas(x_ncl, params, *, kernel_size, padding, batch_block=8):
    in_dim = x_ncl.shape[1]
    out_dim = params["w2"].shape[0]
    has_proj = in_dim != out_dim
    B, _, L = x_ncl.shape
    K, pad = kernel_size, padding
    assert K == 2 * pad + 1, "residual add requires 'same' convs (K == 2*pad+1)"

    Bblk = min(B, batch_block)
    n_blocks = pl.cdiv(B, Bblk)
    Bpad = n_blocks * Bblk

    # NCL -> NLC (channels on the lane axis).  Length padding happens in-kernel.
    x = jnp.transpose(x_ncl, (0, 2, 1)).astype(jnp.float32)
    if Bpad != B:
        x = jnp.pad(x, ((0, Bpad - B), (0, 0), (0, 0)))

    def prep(idx):
        w = params[f"w{idx}"]          # torch layout (Cout, Cin, K)
        b = params[f"b{idx}"]          # (Cout,)
        g = params[f"g{idx}"]          # (Cout,)
        be = params[f"be{idx}"]        # (Cout,)
        # (Cout, Cin, K) -> (K, Cin, Cout) -> (K*Cin, Cout): matches the im2col
        # slab layout [..., k*Cin + c].
        w2d = jnp.transpose(w, (2, 1, 0)).reshape(-1, w.shape[0]).astype(jnp.float32)
        return [w2d,
                b.reshape(1, -1).astype(jnp.float32),
                g.reshape(1, -1).astype(jnp.float32),
                be.reshape(1, -1).astype(jnp.float32)]

    args = [x]
    in_specs = [pl.BlockSpec((Bblk, L, in_dim), lambda i: (i, 0, 0))]
    for idx in (["1"] if has_proj else []) + ["2", "3"]:
        ps = prep(idx)
        args += ps
        in_specs += [pl.BlockSpec(p.shape, lambda i: (0, 0)) for p in ps]

    kernel = _make_resnet_block_kernel(Bblk, L, out_dim, K, pad, has_proj)
    out_nlc = pl.pallas_call(
        kernel,
        out_shape=jax.ShapeDtypeStruct((Bpad, L, out_dim), jnp.float32),
        grid_spec=pltpu.PrefetchScalarGridSpec(
            num_scalar_prefetch=0,
            grid=(n_blocks,),
            in_specs=in_specs,
            out_specs=pl.BlockSpec((Bblk, L, out_dim), lambda i: (i, 0, 0)),
        ),
        compiler_params=pltpu.CompilerParams(
            dimension_semantics=("parallel",)),
    )(*args)
    if Bpad != B:
        out_nlc = out_nlc[:B]
    return jnp.transpose(out_nlc, (0, 2, 1))  # back to NCL


# ----------------------------- pure-JAX reference -----------------------------
def resnet_block_ref(x, params, *, padding):
    def conv(x, w, b):
        y = lax.conv_general_dilated(
            x, w, window_strides=(1,), padding=[(padding, padding)],
            dimension_numbers=("NCH", "OIH", "NCH"))
        return y + b[None, :, None]

    def ln(x, g, b, eps=1e-5):
        xt = jnp.transpose(x, (0, 2, 1))
        mu = xt.mean(-1, keepdims=True)
        var = ((xt - mu) ** 2).mean(-1, keepdims=True)
        y = (xt - mu) / jnp.sqrt(var + eps) * g + b
        return jnp.transpose(y, (0, 2, 1))

    in_dim = x.shape[1]
    out_dim = params["w2"].shape[0]
    if in_dim != out_dim:
        x = ln(conv(x, params["w1"], params["b1"]), params["g1"], params["be1"])
    res = x
    h = jnp.maximum(ln(conv(x, params["w2"], params["b2"]),
                       params["g2"], params["be2"]), 0.0)
    h = ln(conv(h, params["w3"], params["b3"]),
           params["g3"], params["be3"]) + res
    return jnp.maximum(h, 0.0)


# ------------------------------------ main ------------------------------------
if __name__ == "__main__":
    B, in_dim, out_dim, L = 2, 4, 8, 16
    K, pad = 3, 1

    key = jax.random.PRNGKey(0)
    ks = jax.random.split(key, 13)

    def conv_init(kw, kb, cout, cin, k):
        bound = 1.0 / (cin * k) ** 0.5
        w = jax.random.uniform(kw, (cout, cin, k), minval=-bound, maxval=bound)
        b = jax.random.uniform(kb, (cout,), minval=-bound, maxval=bound)
        return w.astype(jnp.float32), b.astype(jnp.float32)

    params = {}
    params["w1"], params["b1"] = conv_init(ks[0], ks[1], out_dim, in_dim, K)
    params["w2"], params["b2"] = conv_init(ks[2], ks[3], out_dim, out_dim, K)
    params["w3"], params["b3"] = conv_init(ks[4], ks[5], out_dim, out_dim, K)
    # LayerNorm params (perturbed from PyTorch defaults to make the test non-trivial).
    params["g1"] = 1.0 + 0.1 * jax.random.normal(ks[6], (out_dim,))
    params["be1"] = 0.1 * jax.random.normal(ks[7], (out_dim,))
    params["g2"] = 1.0 + 0.1 * jax.random.normal(ks[8], (out_dim,))
    params["be2"] = 0.1 * jax.random.normal(ks[9], (out_dim,))
    params["g3"] = 1.0 + 0.1 * jax.random.normal(ks[10], (out_dim,))
    params["be3"] = 0.1 * jax.random.normal(ks[11], (out_dim,))

    x = jax.random.normal(ks[12], (B, in_dim, L), dtype=jnp.float32)

    out = resnet_block_pallas(x, params, kernel_size=K, padding=pad)
    out = jax.block_until_ready(out)

    ref = resnet_block_ref(x, params, padding=pad)
    assert out.shape == (B, out_dim, L), out.shape
    assert jnp.allclose(out, ref, rtol=1e-4, atol=1e-4), (
        float(jnp.max(jnp.abs(out - ref))))

    print("KERNEL_OK")
</pallas_src>

<mosaic_0001>
module attributes {stable_mosaic.version = 11 : i64} {
  func.func @kernel(%arg0: i32, %arg1: memref<2x16x4xf32, #tpu.memory_space<vmem>>, %arg2: memref<12x8xf32, #tpu.memory_space<vmem>>, %arg3: memref<1x8xf32, #tpu.memory_space<vmem>>, %arg4: memref<1x8xf32, #tpu.memory_space<vmem>>, %arg5: memref<1x8xf32, #tpu.memory_space<vmem>>, %arg6: memref<24x8xf32, #tpu.memory_space<vmem>>, %arg7: memref<1x8xf32, #tpu.memory_space<vmem>>, %arg8: memref<1x8xf32, #tpu.memory_space<vmem>>, %arg9: memref<1x8xf32, #tpu.memory_space<vmem>>, %arg10: memref<24x8xf32, #tpu.memory_space<vmem>>, %arg11: memref<1x8xf32, #tpu.memory_space<vmem>>, %arg12: memref<1x8xf32, #tpu.memory_space<vmem>>, %arg13: memref<1x8xf32, #tpu.memory_space<vmem>>, %arg14: memref<2x16x8xf32, #tpu.memory_space<vmem>>) attributes {dimension_semantics = [#tpu.dimension_semantics<parallel>], iteration_bounds = array<i64: 1>, scalar_prefetch = 0 : i64, scratch_operands = 0 : i64, tpu.core_type = #tpu.core_type<tc>, window_params = [{transform_indices = @transform_0, window_bounds = array<i64: 2, 16, 4>}, {pipeline_mode = #tpu.pipeline_mode<synchronous>, transform_indices = @transform_1, window_bounds = array<i64: 12, 8>}, {pipeline_mode = #tpu.pipeline_mode<synchronous>, transform_indices = @transform_2, window_bounds = array<i64: 1, 8>}, {pipeline_mode = #tpu.pipeline_mode<synchronous>, transform_indices = @transform_3, window_bounds = array<i64: 1, 8>}, {pipeline_mode = #tpu.pipeline_mode<synchronous>, transform_indices = @transform_4, window_bounds = array<i64: 1, 8>}, {pipeline_mode = #tpu.pipeline_mode<synchronous>, transform_indices = @transform_5, window_bounds = array<i64: 24, 8>}, {pipeline_mode = #tpu.pipeline_mode<synchronous>, transform_indices = @transform_6, window_bounds = array<i64: 1, 8>}, {pipeline_mode = #tpu.pipeline_mode<synchronous>, transform_indices = @transform_7, window_bounds = array<i64: 1, 8>}, {pipeline_mode = #tpu.pipeline_mode<synchronous>, transform_indices = @transform_8, window_bounds = array<i64: 1, 8>}, {pipeline_mode = #tpu.pipeline_mode<synchronous>, transform_indices = @transform_9, window_bounds = array<i64: 24, 8>}, {pipeline_mode = #tpu.pipeline_mode<synchronous>, transform_indices = @transform_10, window_bounds = array<i64: 1, 8>}, {pipeline_mode = #tpu.pipeline_mode<synchronous>, transform_indices = @transform_11, window_bounds = array<i64: 1, 8>}, {pipeline_mode = #tpu.pipeline_mode<synchronous>, transform_indices = @transform_12, window_bounds = array<i64: 1, 8>}, {transform_indices = @transform_13, window_bounds = array<i64: 2, 16, 8>}]} {
    %c0 = arith.constant 0 : index
    %c0_0 = arith.constant 0 : index
    %c0_1 = arith.constant 0 : index
    %0 = vector.load %arg1[%c0, %c0_0, %c0_1] : memref<2x16x4xf32, #tpu.memory_space<vmem>>, vector<2x16x4xf32>
    %cst = arith.constant 0.000000e+00 : f32
    %1 = vector.broadcast %cst : f32 to vector<2x1x4xf32>
    %2 = tpu.concatenate %1, %0, %1 in 1 : vector<2x1x4xf32>, vector<2x16x4xf32>, vector<2x1x4xf32> -> vector<2x18x4xf32>
    %3 = vector.extract_strided_slice %2 {offsets = [0, 0, 0], sizes = [2, 16, 4], strides = [1, 1, 1]} : vector<2x18x4xf32> to vector<2x16x4xf32>
    %4 = vector.extract_strided_slice %2 {offsets = [0, 1, 0], sizes = [2, 16, 4], strides = [1, 1, 1]} : vector<2x18x4xf32> to vector<2x16x4xf32>
    %5 = vector.extract_strided_slice %2 {offsets = [0, 2, 0], sizes = [2, 16, 4], strides = [1, 1, 1]} : vector<2x18x4xf32> to vector<2x16x4xf32>
    %6 = tpu.concatenate %3, %4, %5 in 2 : vector<2x16x4xf32>, vector<2x16x4xf32>, vector<2x16x4xf32> -> vector<2x16x12xf32>
    %7 = vector.shape_cast %6 : vector<2x16x12xf32> to vector<32x12xf32>
    %c0_2 = arith.constant 0 : index
    %c0_3 = arith.constant 0 : index
    %8 = vector.load %arg2[%c0_2, %c0_3] : memref<12x8xf32, #tpu.memory_space<vmem>>, vector<12x8xf32>
    %cst_4 = arith.constant dense<0.000000e+00> : vector<32x8xf32>
    %9 = tpu.matmul %7, %8, %cst_4 {dimension_numbers = #tpu.dot_dimension_numbers<[1], [0], [0], [1], [0, 0, 1, 1], [], []>} : vector<32x12xf32>, vector<12x8xf32>, vector<32x8xf32> -> vector<32x8xf32>
    %c0_5 = arith.constant 0 : index
    %c0_6 = arith.constant 0 : index
    %10 = vector.load %arg3[%c0_5, %c0_6] : memref<1x8xf32, #tpu.memory_space<vmem>>, vector<1x8xf32>
    %11 = vector.shape_cast %10 : vector<1x8xf32> to vector<8xf32>
    %12 = vector.shape_cast %11 : vector<8xf32> to vector<1x8xf32>
    %13 = vector.broadcast %12 : vector<1x8xf32> to vector<32x8xf32>
    %14 = arith.addf %9, %13 : vector<32x8xf32>
    %cst_7 = arith.constant dense<0.000000e+00> : vector<32xf32>
    %15 = vector.multi_reduction <add>, %14, %cst_7 [1] : vector<32x8xf32> to vector<32xf32>
    %16 = vector.shape_cast %15 : vector<32xf32> to vector<32x1xf32>
    %cst_8 = arith.constant 8.000000e+00 : f32
    %17 = vector.broadcast %cst_8 : f32 to vector<32x1xf32>
    %18 = arith.divf %16, %17 : vector<32x1xf32>
    %19 = vector.broadcast %18 : vector<32x1xf32> to vector<32x8xf32>
    %20 = arith.subf %14, %19 : vector<32x8xf32>
    %21 = arith.mulf %20, %20 : vector<32x8xf32>
    %cst_9 = arith.constant dense<0.000000e+00> : vector<32xf32>
    %22 = vector.multi_reduction <add>, %21, %cst_9 [1] : vector<32x8xf32> to vector<32xf32>
    %23 = vector.shape_cast %22 : vector<32xf32> to vector<32x1xf32>
    %cst_10 = arith.constant 8.000000e+00 : f32
    %24 = vector.broadcast %cst_10 : f32 to vector<32x1xf32>
    %25 = arith.divf %23, %24 : vector<32x1xf32>
    %26 = vector.broadcast %18 : vector<32x1xf32> to vector<32x8xf32>
    %27 = arith.subf %14, %26 : vector<32x8xf32>
    %cst_11 = arith.constant 9.99999974E-6 : f32
    %28 = vector.broadcast %cst_11 : f32 to vector<32x1xf32>
    %29 = arith.addf %25, %28 : vector<32x1xf32>
    %30 = math.rsqrt %29 : vector<32x1xf32>
    %31 = vector.broadcast %30 : vector<32x1xf32> to vector<32x8xf32>
    %32 = arith.mulf %27, %31 : vector<32x8xf32>
    %c0_12 = arith.constant 0 : index
    %c0_13 = arith.constant 0 : index
    %33 = vector.load %arg4[%c0_12, %c0_13] : memref<1x8xf32, #tpu.memory_space<vmem>>, vector<1x8xf32>
    %34 = vector.shape_cast %33 : vector<1x8xf32> to vector<8xf32>
    %35 = vector.shape_cast %34 : vector<8xf32> to vector<1x8xf32>
    %36 = vector.broadcast %35 : vector<1x8xf32> to vector<32x8xf32>
    %37 = arith.mulf %32, %36 : vector<32x8xf32>
    %c0_14 = arith.constant 0 : index
    %c0_15 = arith.constant 0 : index
    %38 = vector.load %arg5[%c0_14, %c0_15] : memref<1x8xf32, #tpu.memory_space<vmem>>, vector<1x8xf32>
    %39 = vector.shape_cast %38 : vector<1x8xf32> to vector<8xf32>
    %40 = vector.shape_cast %39 : vector<8xf32> to vector<1x8xf32>
    %41 = vector.broadcast %40 : vector<1x8xf32> to vector<32x8xf32>
    %42 = arith.addf %37, %41 : vector<32x8xf32>
    %43 = vector.shape_cast %42 : vector<32x8xf32> to vector<2x16x8xf32>
    %cst_16 = arith.constant 0.000000e+00 : f32
    %44 = vector.broadcast %cst_16 : f32 to vector<2x1x8xf32>
    %45 = tpu.concatenate %44, %43, %44 in 1 : vector<2x1x8xf32>, vector<2x16x8xf32>, vector<2x1x8xf32> -> vector<2x18x8xf32>
    %46 = vector.extract_strided_slice %45 {offsets = [0, 0, 0], sizes = [2, 16, 8], strides = [1, 1, 1]} : vector<2x18x8xf32> to vector<2x16x8xf32>
    %47 = vector.extract_strided_slice %45 {offsets = [0, 1, 0], sizes = [2, 16, 8], strides = [1, 1, 1]} : vector<2x18x8xf32> to vector<2x16x8xf32>
    %48 = vector.extract_strided_slice %45 {offsets = [0, 2, 0], sizes = [2, 16, 8], strides = [1, 1, 1]} : vector<2x18x8xf32> to vector<2x16x8xf32>
    %49 = tpu.concatenate %46, %47, %48 in 2 : vector<2x16x8xf32>, vector<2x16x8xf32>, vector<2x16x8xf32> -> vector<2x16x24xf32>
    %50 = vector.shape_cast %49 : vector<2x16x24xf32> to vector<32x24xf32>
    %c0_17 = arith.constant 0 : index
    %c0_18 = arith.constant 0 : index
    %51 = vector.load %arg6[%c0_17, %c0_18] : memref<24x8xf32, #tpu.memory_space<vmem>>, vector<24x8xf32>
    %cst_19 = arith.constant dense<0.000000e+00> : vector<32x8xf32>
    %52 = tpu.matmul %50, %51, %cst_19 {dimension_numbers = #tpu.dot_dimension_numbers<[1], [0], [0], [1], [0, 0, 1, 1], [], []>} : vector<32x24xf32>, vector<24x8xf32>, vector<32x8xf32> -> vector<32x8xf32>
    %c0_20 = arith.constant 0 : index
    %c0_21 = arith.constant 0 : index
    %53 = vector.load %arg7[%c0_20, %c0_21] : memref<1x8xf32, #tpu.memory_space<vmem>>, vector<1x8xf32>
    %54 = vector.shape_cast %53 : vector<1x8xf32> to vector<8xf32>
    %55 = vector.shape_cast %54 : vector<8xf32> to vector<1x8xf32>
    %56 = vector.broadcast %55 : vector<1x8xf32> to vector<32x8xf32>
    %57 = arith.addf %52, %56 : vector<32x8xf32>
    %cst_22 = arith.constant dense<0.000000e+00> : vector<32xf32>
    %58 = vector.multi_reduction <add>, %57, %cst_22 [1] : vector<32x8xf32> to vector<32xf32>
    %59 = vector.shape_cast %58 : vector<32xf32> to vector<32x1xf32>
    %cst_23 = arith.constant 8.000000e+00 : f32
    %60 = vector.broadcast %cst_23 : f32 to vector<32x1xf32>
    %61 = arith.divf %59, %60 : vector<32x1xf32>
    %62 = vector.broadcast %61 : vector<32x1xf32> to vector<32x8xf32>
    %63 = arith.subf %57, %62 : vector<32x8xf32>
    %64 = arith.mulf %63, %63 : vector<32x8xf32>
    %cst_24 = arith.constant dense<0.000000e+00> : vector<32xf32>
    %65 = vector.multi_reduction <add>, %64, %cst_24 [1] : vector<32x8xf32> to vector<32xf32>
    %66 = vector.shape_cast %65 : vector<32xf32> to vector<32x1xf32>
    %cst_25 = arith.constant 8.000000e+00 : f32
    %67 = vector.broadcast %cst_25 : f32 to vector<32x1xf32>
    %68 = arith.divf %66, %67 : vector<32x1xf32>
    %69 = vector.broadcast %61 : vector<32x1xf32> to vector<32x8xf32>
    %70 = arith.subf %57, %69 : vector<32x8xf32>
    %cst_26 = arith.constant 9.99999974E-6 : f32
    %71 = vector.broadcast %cst_26 : f32 to vector<32x1xf32>
    %72 = arith.addf %68, %71 : vector<32x1xf32>
    %73 = math.rsqrt %72 : vector<32x1xf32>
    %74 = vector.broadcast %73 : vector<32x1xf32> to vector<32x8xf32>
    %75 = arith.mulf %70, %74 : vector<32x8xf32>
    %c0_27 = arith.constant 0 : index
    %c0_28 = arith.constant 0 : index
    %76 = vector.load %arg8[%c0_27, %c0_28] : memref<1x8xf32, #tpu.memory_space<vmem>>, vector<1x8xf32>
    %77 = vector.shape_cast %76 : vector<1x8xf32> to vector<8xf32>
    %78 = vector.shape_cast %77 : vector<8xf32> to vector<1x8xf32>
    %79 = vector.broadcast %78 : vector<1x8xf32> to vector<32x8xf32>
    %80 = arith.mulf %75, %79 : vector<32x8xf32>
    %c0_29 = arith.constant 0 : index
    %c0_30 = arith.constant 0 : index
    %81 = vector.load %arg9[%c0_29, %c0_30] : memref<1x8xf32, #tpu.memory_space<vmem>>, vector<1x8xf32>
    %82 = vector.shape_cast %81 : vector<1x8xf32> to vector<8xf32>
    %83 = vector.shape_cast %82 : vector<8xf32> to vector<1x8xf32>
    %84 = vector.broadcast %83 : vector<1x8xf32> to vector<32x8xf32>
    %85 = arith.addf %80, %84 : vector<32x8xf32>
    %cst_31 = arith.constant 0.000000e+00 : f32
    %86 = vector.broadcast %cst_31 : f32 to vector<32x8xf32>
    %87 = arith.maximumf %85, %86 : vector<32x8xf32>
    %88 = vector.shape_cast %87 : vector<32x8xf32> to vector<2x16x8xf32>
    %cst_32 = arith.constant 0.000000e+00 : f32
    %89 = vector.broadcast %cst_32 : f32 to vector<2x1x8xf32>
    %90 = tpu.concatenate %89, %88, %89 in 1 : vector<2x1x8xf32>, vector<2x16x8xf32>, vector<2x1x8xf32> -> vector<2x18x8xf32>
    %91 = vector.extract_strided_slice %90 {offsets = [0, 0, 0], sizes = [2, 16, 8], strides = [1, 1, 1]} : vector<2x18x8xf32> to vector<2x16x8xf32>
    %92 = vector.extract_strided_slice %90 {offsets = [0, 1, 0], sizes = [2, 16, 8], strides = [1, 1, 1]} : vector<2x18x8xf32> to vector<2x16x8xf32>
    %93 = vector.extract_strided_slice %90 {offsets = [0, 2, 0], sizes = [2, 16, 8], strides = [1, 1, 1]} : vector<2x18x8xf32> to vector<2x16x8xf32>
    %94 = tpu.concatenate %91, %92, %93 in 2 : vector<2x16x8xf32>, vector<2x16x8xf32>, vector<2x16x8xf32> -> vector<2x16x24xf32>
    %95 = vector.shape_cast %94 : vector<2x16x24xf32> to vector<32x24xf32>
    %c0_33 = arith.constant 0 : index
    %c0_34 = arith.constant 0 : index
    %96 = vector.load %arg10[%c0_33, %c0_34] : memref<24x8xf32, #tpu.memory_space<vmem>>, vector<24x8xf32>
    %cst_35 = arith.constant dense<0.000000e+00> : vector<32x8xf32>
    %97 = tpu.matmul %95, %96, %cst_35 {dimension_numbers = #tpu.dot_dimension_numbers<[1], [0], [0], [1], [0, 0, 1, 1], [], []>} : vector<32x24xf32>, vector<24x8xf32>, vector<32x8xf32> -> vector<32x8xf32>
    %c0_36 = arith.constant 0 : index
    %c0_37 = arith.constant 0 : index
    %98 = vector.load %arg11[%c0_36, %c0_37] : memref<1x8xf32, #tpu.memory_space<vmem>>, vector<1x8xf32>
    %99 = vector.shape_cast %98 : vector<1x8xf32> to vector<8xf32>
    %100 = vector.shape_cast %99 : vector<8xf32> to vector<1x8xf32>
    %101 = vector.broadcast %100 : vector<1x8xf32> to vector<32x8xf32>
    %102 = arith.addf %97, %101 : vector<32x8xf32>
    %cst_38 = arith.constant dense<0.000000e+00> : vector<32xf32>
    %103 = vector.multi_reduction <add>, %102, %cst_38 [1] : vector<32x8xf32> to vector<32xf32>
    %104 = vector.shape_cast %103 : vector<32xf32> to vector<32x1xf32>
    %cst_39 = arith.constant 8.000000e+00 : f32
    %105 = vector.broadcast %cst_39 : f32 to vector<32x1xf32>
    %106 = arith.divf %104, %105 : vector<32x1xf32>
    %107 = vector.broadcast %106 : vector<32x1xf32> to vector<32x8xf32>
    %108 = arith.subf %102, %107 : vector<32x8xf32>
    %109 = arith.mulf %108, %108 : vector<32x8xf32>
    %cst_40 = arith.constant dense<0.000000e+00> : vector<32xf32>
    %110 = vector.multi_reduction <add>, %109, %cst_40 [1] : vector<32x8xf32> to vector<32xf32>
    %111 = vector.shape_cast %110 : vector<32xf32> to vector<32x1xf32>
    %cst_41 = arith.constant 8.000000e+00 : f32
    %112 = vector.broadcast %cst_41 : f32 to vector<32x1xf32>
    %113 = arith.divf %111, %112 : vector<32x1xf32>
    %114 = vector.broadcast %106 : vector<32x1xf32> to vector<32x8xf32>
    %115 = arith.subf %102, %114 : vector<32x8xf32>
    %cst_42 = arith.constant 9.99999974E-6 : f32
    %116 = vector.broadcast %cst_42 : f32 to vector<32x1xf32>
    %117 = arith.addf %113, %116 : vector<32x1xf32>
    %118 = math.rsqrt %117 : vector<32x1xf32>
    %119 = vector.broadcast %118 : vector<32x1xf32> to vector<32x8xf32>
    %120 = arith.mulf %115, %119 : vector<32x8xf32>
    %c0_43 = arith.constant 0 : index
    %c0_44 = arith.constant 0 : index
    %121 = vector.load %arg12[%c0_43, %c0_44] : memref<1x8xf32, #tpu.memory_space<vmem>>, vector<1x8xf32>
    %122 = vector.shape_cast %121 : vector<1x8xf32> to vector<8xf32>
    %123 = vector.shape_cast %122 : vector<8xf32> to vector<1x8xf32>
    %124 = vector.broadcast %123 : vector<1x8xf32> to vector<32x8xf32>
    %125 = arith.mulf %120, %124 : vector<32x8xf32>
    %c0_45 = arith.constant 0 : index
    %c0_46 = arith.constant 0 : index
    %126 = vector.load %arg13[%c0_45, %c0_46] : memref<1x8xf32, #tpu.memory_space<vmem>>, vector<1x8xf32>
    %127 = vector.shape_cast %126 : vector<1x8xf32> to vector<8xf32>
    %128 = vector.shape_cast %127 : vector<8xf32> to vector<1x8xf32>
    %129 = vector.broadcast %128 : vector<1x8xf32> to vector<32x8xf32>
    %130 = arith.addf %125, %129 : vector<32x8xf32>
    %131 = arith.addf %130, %42 : vector<32x8xf32>
    %cst_47 = arith.constant 0.000000e+00 : f32
    %132 = vector.broadcast %cst_47 : f32 to vector<32x8xf32>
    %133 = arith.maximumf %131, %132 : vector<32x8xf32>
    %134 = vector.shape_cast %133 : vector<32x8xf32> to vector<2x16x8xf32>
    %c0_48 = arith.constant 0 : index
    %c0_49 = arith.constant 0 : index
    %c0_50 = arith.constant 0 : index
    %135 = vector.load %arg14[%c0_48, %c0_49, %c0_50] : memref<2x16x8xf32, #tpu.memory_space<vmem>>, vector<2x16x8xf32>
    tpu.vector_store %arg14[%c0_48, %c0_49, %c0_50], %134 {strides = array<i32>} : memref<2x16x8xf32, #tpu.memory_space<vmem>>, vector<2x16x8xf32>,
    return
  }
  func.func @transform_0(%arg0: i32) -> (i32, i32, i32) {
    %c0_i32 = arith.constant 0 : i32
    %c0_i32_0 = arith.constant 0 : i32
    %c0_i32_1 = arith.constant 0 : i32
    return %arg0, %c0_i32, %c0_i32_0 : i32, i32, i32
  }
  func.func @transform_1(%arg0: i32) -> (i32, i32) {
    %c0_i32 = arith.constant 0 : i32
    %c0_i32_0 = arith.constant 0 : i32
    %c0_i32_1 = arith.constant 0 : i32
    return %c0_i32, %c0_i32_0 : i32, i32
  }
  func.func @transform_2(%arg0: i32) -> (i32, i32) {
    %c0_i32 = arith.constant 0 : i32
    %c0_i32_0 = arith.constant 0 : i32
    %c0_i32_1 = arith.constant 0 : i32
    return %c0_i32, %c0_i32_0 : i32, i32
  }
  func.func @transform_3(%arg0: i32) -> (i32, i32) {
    %c0_i32 = arith.constant 0 : i32
    %c0_i32_0 = arith.constant 0 : i32
    %c0_i32_1 = arith.constant 0 : i32
    return %c0_i32, %c0_i32_0 : i32, i32
  }
  func.func @transform_4(%arg0: i32) -> (i32, i32) {
    %c0_i32 = arith.constant 0 : i32
    %c0_i32_0 = arith.constant 0 : i32
    %c0_i32_1 = arith.constant 0 : i32
    return %c0_i32, %c0_i32_0 : i32, i32
  }
  func.func @transform_5(%arg0: i32) -> (i32, i32) {
    %c0_i32 = arith.constant 0 : i32
    %c0_i32_0 = arith.constant 0 : i32
    %c0_i32_1 = arith.constant 0 : i32
    return %c0_i32, %c0_i32_0 : i32, i32
  }
  func.func @transform_6(%arg0: i32) -> (i32, i32) {
    %c0_i32 = arith.constant 0 : i32
    %c0_i32_0 = arith.constant 0 : i32
    %c0_i32_1 = arith.constant 0 : i32
    return %c0_i32, %c0_i32_0 : i32, i32
  }
  func.func @transform_7(%arg0: i32) -> (i32, i32) {
    %c0_i32 = arith.constant 0 : i32
    %c0_i32_0 = arith.constant 0 : i32
    %c0_i32_1 = arith.constant 0 : i32
    return %c0_i32, %c0_i32_0 : i32, i32
  }
  func.func @transform_8(%arg0: i32) -> (i32, i32) {
    %c0_i32 = arith.constant 0 : i32
    %c0_i32_0 = arith.constant 0 : i32
    %c0_i32_1 = arith.constant 0 : i32
    return %c0_i32, %c0_i32_0 : i32, i32
  }
  func.func @transform_9(%arg0: i32) -> (i32, i32) {
    %c0_i32 = arith.constant 0 : i32
    %c0_i32_0 = arith.constant 0 : i32
    %c0_i32_1 = arith.constant 0 : i32
    return %c0_i32, %c0_i32_0 : i32, i32
  }
  func.func @transform_10(%arg0: i32) -> (i32, i32) {
    %c0_i32 = arith.constant 0 : i32
    %c0_i32_0 = arith.constant 0 : i32
    %c0_i32_1 = arith.constant 0 : i32
    return %c0_i32, %c0_i32_0 : i32, i32
  }
  func.func @transform_11(%arg0: i32) -> (i32, i32) {
    %c0_i32 = arith.constant 0 : i32
    %c0_i32_0 = arith.constant 0 : i32
    %c0_i32_1 = arith.constant 0 : i32
    return %c0_i32, %c0_i32_0 : i32, i32
  }
  func.func @transform_12(%arg0: i32) -> (i32, i32) {
    %c0_i32 = arith.constant 0 : i32
    %c0_i32_0 = arith.constant 0 : i32
    %c0_i32_1 = arith.constant 0 : i32
    return %c0_i32, %c0_i32_0 : i32, i32
  }
  func.func @transform_13(%arg0: i32) -> (i32, i32, i32) {
    %c0_i32 = arith.constant 0 : i32
    %c0_i32_0 = arith.constant 0 : i32
    %c0_i32_1 = arith.constant 0 : i32
    return %arg0, %c0_i32, %c0_i32_0 : i32, i32, i32
  }
}

</mosaic_0001>

<bundles_post_ra>
// kernel: tpu_custom_call.1
= control target key start
LH: loop header
LB: loop body
LE: loop exit
PB: predicated region body
PF: predicated region fallthrough
CT: control target
= control target key end

     0   :  { %vm52_vm0 = vcmask 1040384   ;;  %vm96_vm1 = vcmask 1045504   ;;  %vm73_vm2 = vcmask 1046528   ;;  %vm151_vm3 = vcmask 1043456   ;;  %s973_s19 = smov 8   ;;  %s974_s20 = smov 4   ;;  %s1265_s0 = inlined_call_operand.vmem [shape: f32[2,16,4], index: 0, kind: input, shape index: {}]   ;;  %s1266_s1 = inlined_call_operand.vmem [shape: f32[12,8], index: 1, kind: input, shape index: {}]   ;;  %s1267_s2 = inlined_call_operand.vmem [shape: f32[1,8], index: 2, kind: input, shape index: {}]   ;;  %s1268_s3 = inlined_call_operand.vmem [shape: f32[1,8], index: 3, kind: input, shape index: {}]   ;;  %s1269_s4 = inlined_call_operand.vmem [shape: f32[1,8], index: 4, kind: input, shape index: {}]   ;;  %s1270_s5 = inlined_call_operand.vmem [shape: f32[24,8], index: 5, kind: input, shape index: {}]   ;;  %s1271_s6 = inlined_call_operand.vmem [shape: f32[1,8], index: 6, kind: input, shape index: {}]   ;;  %s1272_s7 = inlined_call_operand.vmem [shape: f32[1,8], index: 7, kind: input, shape index: {}]   ;;  %s1273_s8 = inlined_call_operand.vmem [shape: f32[1,8], index: 8, kind: input, shape index: {}]   ;;  %s1274_s9 = inlined_call_operand.vmem [shape: f32[24,8], index: 9, kind: input, shape index: {}]   ;;  %s1275_s10 = inlined_call_operand.vmem [shape: f32[1,8], index: 10, kind: input, shape index: {}]   ;;  %s1276_s11 = inlined_call_operand.vmem [shape: f32[1,8], index: 11, kind: input, shape index: {}]   ;;  %s1277_s12 = inlined_call_operand.vmem [shape: f32[1,8], index: 12, kind: input, shape index: {}]   ;;  %s1278_s13 = inlined_call_operand.vmem [shape: f32[2,16,8], index: 13, kind: output, shape index: {}]  }
   0x1   :  { %v44_v0 = vld [vmem:[%s1265_s0] sm:$0xff]  ;;  %v45_v1 = vld [vmem:[%s1265_s0 + $0x8] sm:$0xff]  ;;  %v46_v2 = vld [vmem:[%s1265_s0 + $0x10] sm:$0xff]  ;;  %vm975_vm4 = vmmov 1   ;;  %vm119_vm6 = vcmask 31744   ;;  %vm124_vm7 = vcmask 64512  }
   0x2   :  { %v53_v3 = vrot.slane %v44_v0, 7  ;;  %v54_v4 = vrot.slane %v45_v1, 7  ;;  %v47_v5 = vld [vmem:[%s1265_s0 + $0x18] sm:$0xff]  ;;  %v56_v6 = vrot.slane %v46_v2, 7  ;;  %v129_v20 = vld [vmem:[%s1266_s1] sm:$0xff]  ;;  %vm928_vm5 = vmpackc.low %vm151_vm3, %vm975_vm4  ;;  %vm138_vm8 = vcmask 97280  }
   0x3   :  { %v57_v7 = vrot.slane %v47_v5, 7  ;;  %v130_v21 = vld [vmem:[%s1266_s1 + $0x8] sm:$0xf]  ;;  %v851_v53 = vld [vmem:[%s1267_s2] ss:$0 sm:$0xff]  ;;  %vm387_vm9 = vcmask 130048  }
   0x4   :  { %v55_v8 = vsel %vm52_vm0, %v53_v3, %v54_v4  ;;  %v65_v9 = vsel %vm52_vm0, 0.0, %v53_v3  ;;  %v67_v10 = vsel %vm52_vm0, %v54_v4, 0.0  ;;  %v66_v11 = vsel %vm52_vm0, 0.0, %v56_v6 }
   0x5   :  { %v97_v12 = vrot.slane %v65_v9, 2  ;;  %v98_v13 = vrot.slane %v55_v8, 2  ;;  %v74_v14 = vrot.slane %v65_v9, 1  ;;  %v75_v15 = vrot.slane %v55_v8, 1 }
   0x6   :  { %v100_v16 = vrot.slane %v67_v10, 2  ;;  %v77_v17 = vrot.slane %v67_v10, 1  ;;  %v58_v18 = vsel %vm52_vm0, %v56_v6, %v57_v7  ;;  %v68_v19 = vsel %vm52_vm0, %v57_v7, 0.0 }
   0x7   :  { %v99_v22 = vsel %vm96_vm1, %v97_v12, %v98_v13  ;;  %v76_v23 = vsel %vm73_vm2, %v74_v14, %v75_v15  ;;  %v80_v24 = vrot.slane %v58_v18, 1  ;;  %v82_v25 = vrot.slane %v68_v19, 1 }
   0x8   :  { %107 = vrot.lane.b32.xlu1 %v99_v22, %s973_s19  ;;  %84 = vrot.lane.b32.xlu0 %v76_v23, %s974_s20  ;;  %v101_v26 = vsel %vm96_vm1, %v98_v13, %v100_v16  ;;  %v78_v27 = vsel %vm73_vm2, %v75_v15, %v77_v17  ;;  %v79_v28 = vrot.slane %v66_v11, 1  ;;  %v927_v29 = vpack.c.bf16 %v130_v21, %v129_v20 }
   0x9   :  { %v103_v30 = vrot.slane %v58_v18, 2  ;;  %v83_v31 = vsel %vm73_vm2, %v80_v24, %v82_v25  ;;  %v105_v33 = vrot.slane %v68_v19, 2  ;;  %v102_v34 = vrot.slane %v66_v11, 2 }
   0xa   :  { %929 = vmatprep.subr.msk.bf16.mxu0 %vm928_vm5, %v927_v29  ;;  %v81_v32 = vsel %vm73_vm2, %v79_v28, %v80_v24  ;;  %vm402_vm10 = vcmask 195584  }
   0xb   :  { %932 = vmatpush3.bf16.msk.msra.mxu0 %vm928_vm5, %v927_v29  ;;  %v106_v35 = vsel %vm96_vm1, %v103_v30, %v105_v33  ;;  %v104_v36 = vsel %vm96_vm1, %v102_v34, %v103_v30  ;;  %v857_v34 = vld [vmem:[%s1268_s3] ss:$0 sm:$0xff] }
   0xc   :  { %109 = vrot.lane.b32.xlu1 %v101_v26, %s973_s19  ;;  %86 = vrot.lane.b32.xlu0 %v78_v27, %s974_s20 }
  0x10   :  { %90 = vrot.lane.b32.xlu1 %v83_v31, %s974_s20  ;;  %88 = vrot.lane.b32.xlu0 %v81_v32, %s974_s20 }
  0x14   :  { %113 = vrot.lane.b32.xlu1 %v106_v35, %s973_s19  ;;  %111 = vrot.lane.b32.xlu0 %v104_v36, %s973_s19 }
  0x7a   :  { %v108_v37 = vpop.permute.xlu1 %107  ;;  %v85_v38 = vpop.permute.xlu0 %84 }
  0x7b   :  { %v120_v39 = vsel %vm119_vm6, %v65_v9, %v85_v38 }
  0x7c   :  { %v125_v40 = vsel %vm124_vm7, %v120_v39, %v108_v37  ;;  %v858_v39 = vld [vmem:[%s1269_s4] ss:$0 sm:$0xff] }
  0x7d   :  { %897 = vmatprep.mubr.msk.f32.mxu0 %vm138_vm8, %v125_v40  ;;  %v392_v40 = vld [vmem:[%s1270_s5] sm:$0xff] }
  0x7e   :  { %v110_v41 = vpop.permute.xlu1 %109  ;;  %v87_v42 = vpop.permute.xlu0 %86 }
  0x7f   :  { %v121_v43 = vsel %vm119_vm6, %v55_v8, %v87_v42 }
  0x80   :  { %v126_v44 = vsel %vm124_vm7, %v121_v43, %v110_v41  ;;  %v393_v41 = vld [vmem:[%s1270_s5 + $0x8] sm:$0xff] }
  0x81   :  { %898 = vmatmul.mubr.msk.f32.vlgmr.msra.gmra.mrb[0].mxu0 %vm138_vm8, %v126_v44  ;;  %v933_v43 = vpack.c.bf16 %v393_v41, %v392_v40 }
  0x82   :  { %v91_v45 = vpop.permute.xlu1 %90  ;;  %v89_v46 = vpop.permute.xlu0 %88 }
  0x83   :  { %v123_v47 = vsel %vm119_vm6, %v58_v18, %v91_v45  ;;  %v122_v48 = vsel %vm119_vm6, %v66_v11, %v89_v46  ;;  %934 = vmatprep.subr.bf16.mxu1 %v933_v43 }
  0x84   :  { %936 = vmatpush3.bf16.msra.mxu1 %v933_v43 }
  0x86   :  { %v114_v49 = vpop.permute.xlu1 %113  ;;  %v112_v50 = vpop.permute.xlu0 %111 }
  0x87   :  { %v128_v51 = vsel %vm124_vm7, %v123_v47, %v114_v49  ;;  %v127_v52 = vsel %vm124_vm7, %v122_v48, %v112_v50  ;;  %v394_v47 = vld [vmem:[%s1270_s5 + $0x10] sm:$0xff]  ;;  %s976_s5 = smov 16  }
  0x88   :  { %900 = vmatprep.mubr.msk.f32.mxu0 %vm138_vm8, %v127_v52  ;;  %907 = vmatprep.subr.mxu1 %v394_v47 }
  0x89   :  { %901 = vmatmul.mubr.msk.f32.gmra.mrb[2].mxu0 %vm138_vm8, %v128_v51  ;;  %908 = vmatpush3.msra.mxu1 %v394_v47 }
 0x154   :  { %v899_v54 = vpop.f32.mrb[0].mxu0 }
 0x155   :  { %v227_v55 = vadd.f32 %v899_v54, %v851_v53  ;;  %v221_v56 = vpop.f32.mrb[1].mxu0 }
 0x156   :  { %v222_v57 = vadd.f32 %v851_v53, %v221_v56 }
 0x157   :  { %v243_v58 = vsel %vm124_vm7, %v227_v55, 0.0 }
 0x158   :  { %244 = vadd.xlane.f32.xlu1 %v243_v58  ;;  %v240_v59 = vsel %vm124_vm7, %v222_v57, 0.0 }
 0x159   :  { %241 = vadd.xlane.f32.xlu0 %v240_v59 }
 0x15c   :  { %v902_v60 = vpop.f32.mrb[2].mxu0 }
 0x15d   :  { %v231_v61 = vpop.f32.mrb[3].mxu0  ;;  %v237_v63 = vadd.f32 %v902_v60, %v851_v53 }
 0x15e   :  { %v232_v62 = vadd.f32 %v851_v53, %v231_v61 }
 0x15f   :  { %v249_v1 = vsel %vm124_vm7, %v237_v63, 0.0 }
 0x160   :  { %v246_v0 = vsel %vm124_vm7, %v232_v62, 0.0 }
 0x161   :  { %247 = vadd.xlane.f32.xlu0 %v246_v0 }
 0x165   :  { %250 = vadd.xlane.f32.xlu0 %v249_v1 }
 0x1e5   :  { %v245_v2 = vpop.xlane.xlu1 %244 }
 0x1e6   :  { %v254_v3 = vmul.f32 0.125, %v245_v2  ;;  %v242_v4 = vpop.xlane.xlu0 %241 }
 0x1e7   :  { %v253_v5 = vmul.f32 0.125, %v242_v4 }
 0x1e8   :  { %v258_v6 = vsub.f32 %v227_v55, %v254_v3 }
 0x1e9   :  { %v257_v7 = vsub.f32 %v222_v57, %v253_v5 }
 0x1ea   :  { %v262_v8 = vmul.f32 %v258_v6, %v258_v6 }
 0x1eb   :  { %v261_v9 = vmul.f32 %v257_v7, %v257_v7 }
 0x1ec   :  { %v268_v10 = vsel %vm124_vm7, %v262_v8, 0.0 }
 0x1ed   :  { %269 = vadd.xlane.f32.xlu0 %v268_v10  ;;  %v265_v11 = vsel %vm124_vm7, %v261_v9, 0.0 }
 0x1ee   :  { %266 = vadd.xlane.f32.xlu1 %v265_v11  ;;  %v248_v12 = vpop.xlane.xlu0 %247 }
 0x1ef   :  { %v255_v13 = vmul.f32 0.125, %v248_v12 }
 0x1f1   :  { %v259_v14 = vsub.f32 %v232_v62, %v255_v13 }
 0x1f2   :  { %v251_v15 = vpop.xlane.xlu0 %250 }
 0x1f3   :  { %v256_v16 = vmul.f32 0.125, %v251_v15  ;;  %v263_v17 = vmul.f32 %v259_v14, %v259_v14 }
 0x1f5   :  { %v260_v18 = vsub.f32 %v237_v63, %v256_v16  ;;  %v271_v19 = vsel %vm124_vm7, %v263_v17, 0.0 }
 0x1f6   :  { %272 = vadd.xlane.f32.xlu1 %v271_v19 }
 0x1f7   :  { %v264_v20 = vmul.f32 %v260_v18, %v260_v18 }
 0x1f9   :  { %v274_v21 = vsel %vm124_vm7, %v264_v20, 0.0 }
 0x1fa   :  { %275 = vadd.xlane.f32.xlu0 %v274_v21 }
 0x27a   :  { %v270_v22 = vpop.xlane.xlu0 %269 }
 0x27b   :  { %v278_v23 = vmul.f32 0.125, %v270_v22  ;;  %v267_v24 = vpop.xlane.xlu1 %266 }
 0x27c   :  { %v277_v25 = vmul.f32 0.125, %v267_v24 }
 0x27d   :  { %v282_v26 = vadd.f32 1e-05, %v278_v23 }
 0x27e   :  { %v281_v27 = vadd.f32 1e-05, %v277_v25 }
 0x27f   :  { %949 = vrsqrt.f32 %v282_v26 }
 0x280   :  { %951 = vrsqrt.f32 %v281_v27 }
 0x283   :  { %v273_v28 = vpop.xlane.xlu1 %272 }
 0x284   :  { %v279_v29 = vmul.f32 0.125, %v273_v28 }
 0x286   :  { %v283_v30 = vadd.f32 1e-05, %v279_v29 }
 0x287   :  { %v276_v31 = vpop.xlane.xlu0 %275 }
 0x288   :  { %953 = vrsqrt.f32 %v283_v30  ;;  %v280_v32 = vmul.f32 0.125, %v276_v31 }
 0x289   :  { %v950_v33 = vpop.eup %949 }
 0x28a   :  { %v952_v35 = vpop.eup %951  ;;  %v290_v36 = vmul.f32 %v950_v33, %v258_v6  ;;  %v284_v37 = vadd.f32 1e-05, %v280_v32 }
 0x28b   :  { %v289_v38 = vmul.f32 %v952_v35, %v257_v7 }
 0x28c   :  { %955 = vrsqrt.f32 %v284_v37  ;;  %v301_v42 = vmul.f32 %v857_v34, %v290_v36 }
 0x28d   :  { %v300_v44 = vmul.f32 %v857_v34, %v289_v38  ;;  %v859_v38 = vld [vmem:[%s1271_s6] ss:$0 sm:$0xff] }
 0x28e   :  { %v1119_v45 = vadd.f32 %v858_v39, %v301_v42 }
 0x28f   :  { %v1121_v46 = vadd.f32 %v858_v39, %v300_v44 }
 0x290   :  { %v320_v48 = vrot.slane %v1119_v45, 7 }
 0x291   :  { %v319_v49 = vrot.slane %v1121_v46, 7 }
 0x292   :  { %v954_v50 = vpop.eup %953  ;;  %v333_v51 = vsel %vm52_vm0, %v320_v48, 0.0 }
 0x293   :  { %v291_v52 = vmul.f32 %v954_v50, %v259_v14  ;;  %v321_v53 = vsel %vm52_vm0, %v319_v49, %v320_v48  ;;  %v342_v54 = vrot.slane %v333_v51, 1  ;;  %v331_v55 = vsel %vm52_vm0, 0.0, %v319_v49 }
 0x294   :  { %v340_v56 = vrot.slane %v321_v53, 1  ;;  %v339_v57 = vrot.slane %v331_v55, 1  ;;  %v361_v62 = vrot.slane %v331_v55, 2  ;;  %v362_v63 = vrot.slane %v321_v53, 2 }
 0x295   :  { %v302_v58 = vmul.f32 %v857_v34, %v291_v52  ;;  %v364_v5 = vrot.slane %v333_v51, 2 }
 0x296   :  { %v956_v59 = vpop.eup %955  ;;  %v343_v60 = vsel %vm73_vm2, %v340_v56, %v342_v54  ;;  %v341_v61 = vsel %vm73_vm2, %v339_v57, %v340_v56  ;;  %v363_v4 = vsel %vm96_vm1, %v361_v62, %v362_v63 }
 0x297   :  { %v292_v0 = vmul.f32 %v956_v59, %v260_v18  ;;  %351 = vrot.lane.b32.xlu0 %v343_v60, %s973_s19  ;;  %349 = vrot.lane.b32.xlu1 %v341_v61, %s973_s19  ;;  %v1135_v1 = vadd.f32 %v858_v39, %v302_v58  ;;  %v365_v9 = vsel %vm96_vm1, %v362_v63, %v364_v5 }
 0x299   :  { %v303_v2 = vmul.f32 %v857_v34, %v292_v0  ;;  %v322_v3 = vrot.slane %v1135_v1, 7 }
 0x29b   :  { %371 = vrot.lane.b32.xlu1 %v363_v4, %s976_s5  ;;  %v1140_v6 = vadd.f32 %v858_v39, %v303_v2  ;;  %v332_v8 = vsel %vm52_vm0, 0.0, %v322_v3 }
 0x29c   :  { %v344_v14 = vrot.slane %v332_v8, 1  ;;  %v366_v19 = vrot.slane %v332_v8, 2 }
 0x29d   :  { %v323_v7 = vrot.slane %v1140_v6, 7 }
 0x29f   :  { %373 = vrot.lane.b32.xlu1 %v365_v9, %s976_s5  ;;  %v324_v10 = vsel %vm52_vm0, %v322_v3, %v323_v7  ;;  %v334_v11 = vsel %vm52_vm0, %v323_v7, 0.0 }
 0x2a0   :  { %v345_v12 = vrot.slane %v324_v10, 1  ;;  %v347_v13 = vrot.slane %v334_v11, 1  ;;  %v367_v17 = vrot.slane %v324_v10, 2  ;;  %v369_v18 = vrot.slane %v334_v11, 2 }
 0x2a2   :  { %v348_v15 = vsel %vm73_vm2, %v345_v12, %v347_v13  ;;  %v346_v16 = vsel %vm73_vm2, %v344_v14, %v345_v12  ;;  %v370_v20 = vsel %vm96_vm1, %v367_v17, %v369_v18  ;;  %v368_v21 = vsel %vm96_vm1, %v366_v19, %v367_v17 }
 0x2a3   :  { %355 = vrot.lane.b32.xlu1 %v348_v15, %s973_s19  ;;  %353 = vrot.lane.b32.xlu0 %v346_v16, %s973_s19 }
 0x2a7   :  { %377 = vrot.lane.b32.xlu1 %v370_v20, %s976_s5  ;;  %375 = vrot.lane.b32.xlu0 %v368_v21, %s976_s5 }
 0x309   :  { %v350_v22 = vpop.permute.xlu1 %349  ;;  %v352_v25 = vpop.permute.xlu0 %351 }
 0x30a   :  { %v383_v23 = vsel %vm124_vm7, %v331_v55, %v350_v22  ;;  %v384_v27 = vsel %vm124_vm7, %v321_v53, %v352_v25  ;;  %v864_v22 = vld [vmem:[%s1272_s7] ss:$0 sm:$0xff] }
 0x30d   :  { %v372_v24 = vpop.permute.xlu1 %371 }
 0x30e   :  { %v388_v26 = vsel %vm387_vm9, %v383_v23, %v372_v24 }
 0x30f   :  { %909 = vmatprep.mubr.msk.f32.mxu1 %vm402_vm10, %v388_v26 }
 0x311   :  { %v374_v28 = vpop.permute.xlu1 %373 }
 0x312   :  { %v389_v29 = vsel %vm387_vm9, %v384_v27, %v374_v28  ;;  %v865_v28 = vld [vmem:[%s1273_s8] ss:$0 sm:$0xff] }
 0x313   :  { %910 = vmatmul.mubr.msk.f32.vlgmr.msra.gmra.mrb[0].mxu1 %vm402_vm10, %v389_v29 }
 0x315   :  { %v356_v30 = vpop.permute.xlu1 %355  ;;  %v354_v31 = vpop.permute.xlu0 %353 }
 0x316   :  { %v386_v32 = vsel %vm124_vm7, %v324_v10, %v356_v30  ;;  %v385_v33 = vsel %vm124_vm7, %v332_v8, %v354_v31 }
 0x319   :  { %v378_v34 = vpop.permute.xlu1 %377  ;;  %v376_v35 = vpop.permute.xlu0 %375 }
 0x31a   :  { %v391_v36 = vsel %vm387_vm9, %v386_v32, %v378_v34  ;;  %v390_v37 = vsel %vm387_vm9, %v385_v33, %v376_v35 }
 0x31b   :  { %912 = vmatprep.mubr.msk.f32.mxu1 %vm402_vm10, %v390_v37  ;;  %v655_v37 = vld [vmem:[%s1274_s9 + $0x8] sm:$0xff] }
 0x31c   :  { %913 = vmatmul.mubr.msk.f32.gmra.mrb[2].mxu1 %vm402_vm10, %v391_v36  ;;  %v654_v36 = vld [vmem:[%s1274_s9] sm:$0xff] }
 0x3e6   :  { %v911_v39 = vpop.f32.mrb[0].mxu1 }
 0x3e7   :  { %v487_v40 = vadd.f32 %v911_v39, %v859_v38  ;;  %v481_v41 = vpop.f32.mrb[1].mxu1 }
 0x3e8   :  { %v482_v42 = vadd.f32 %v859_v38, %v481_v41 }
 0x3e9   :  { %v503_v43 = vsel %vm124_vm7, %v487_v40, 0.0 }
 0x3ea   :  { %504 = vadd.xlane.f32.xlu1 %v503_v43  ;;  %v500_v44 = vsel %vm124_vm7, %v482_v42, 0.0 }
 0x3eb   :  { %501 = vadd.xlane.f32.xlu0 %v500_v44 }
 0x3ef   :  { %v914_v47 = vpop.f32.mrb[2].mxu1 }
 0x3f0   :  { %v491_v48 = vpop.f32.mrb[3].mxu1  ;;  %v497_v50 = vadd.f32 %v914_v47, %v859_v38 }
 0x3f1   :  { %v492_v49 = vadd.f32 %v859_v38, %v491_v48 }
 0x3f2   :  { %v509_v52 = vsel %vm124_vm7, %v497_v50, 0.0 }
 0x3f3   :  { %v506_v51 = vsel %vm124_vm7, %v492_v49, 0.0 }
 0x3f4   :  { %507 = vadd.xlane.f32.xlu0 %v506_v51 }
 0x3f8   :  { %510 = vadd.xlane.f32.xlu0 %v509_v52 }
 0x477   :  { %v505_v53 = vpop.xlane.xlu1 %504 }
 0x478   :  { %v513_v54 = vmul.f32 0.125, %v505_v53  ;;  %v502_v55 = vpop.xlane.xlu0 %501 }
 0x479   :  { %v512_v56 = vmul.f32 0.125, %v502_v55 }
 0x47a   :  { %v517_v57 = vsub.f32 %v487_v40, %v513_v54  ;;  %v937_v40 = vpack.c.bf16 %v655_v37, %v654_v36 }
 0x47b   :  { %v516_v58 = vsub.f32 %v482_v42, %v512_v56 }
 0x47c   :  { %v521_v59 = vmul.f32 %v517_v57, %v517_v57  ;;  %938 = vmatprep.subr.bf16.mxu0 %v937_v40  ;;  %941 = vmatprep.subr.bf16.mxu1 %v937_v40 }
 0x47d   :  { %v520_v60 = vmul.f32 %v516_v58, %v516_v58  ;;  %940 = vmatpush3.bf16.msra.mxu0 %v937_v40  ;;  %943 = vmatpush3.bf16.msra.mxu1 %v937_v40 }
 0x47e   :  { %v527_v61 = vsel %vm124_vm7, %v521_v59, 0.0 }
 0x47f   :  { %528 = vadd.xlane.f32.xlu0 %v527_v61  ;;  %v524_v62 = vsel %vm124_vm7, %v520_v60, 0.0 }
 0x480   :  { %525 = vadd.xlane.f32.xlu1 %v524_v62 }
 0x481   :  { %v508_v63 = vpop.xlane.xlu0 %507 }
 0x482   :  { %v514_v0 = vmul.f32 0.125, %v508_v63 }
 0x484   :  { %v518_v2 = vsub.f32 %v492_v49, %v514_v0 }
 0x485   :  { %v511_v3 = vpop.xlane.xlu0 %510 }
 0x486   :  { %v515_v4 = vmul.f32 0.125, %v511_v3  ;;  %v522_v5 = vmul.f32 %v518_v2, %v518_v2 }
 0x488   :  { %v519_v7 = vsub.f32 %v497_v50, %v515_v4  ;;  %v530_v8 = vsel %vm124_vm7, %v522_v5, 0.0 }
 0x489   :  { %531 = vadd.xlane.f32.xlu1 %v530_v8 }
 0x48a   :  { %v523_v9 = vmul.f32 %v519_v7, %v519_v7 }
 0x48c   :  { %v533_v10 = vsel %vm124_vm7, %v523_v9, 0.0 }
 0x48d   :  { %534 = vadd.xlane.f32.xlu0 %v533_v10 }
 0x50c   :  { %v529_v11 = vpop.xlane.xlu0 %528 }
 0x50d   :  { %v537_v12 = vmul.f32 0.125, %v529_v11  ;;  %v526_v13 = vpop.xlane.xlu1 %525 }
 0x50e   :  { %v536_v14 = vmul.f32 0.125, %v526_v13 }
 0x50f   :  { %v541_v15 = vadd.f32 1e-05, %v537_v12 }
 0x510   :  { %v540_v16 = vadd.f32 1e-05, %v536_v14 }
 0x511   :  { %957 = vrsqrt.f32 %v541_v15 }
 0x512   :  { %959 = vrsqrt.f32 %v540_v16 }
 0x516   :  { %v532_v17 = vpop.xlane.xlu1 %531 }
 0x517   :  { %v538_v18 = vmul.f32 0.125, %v532_v17 }
 0x519   :  { %v542_v19 = vadd.f32 1e-05, %v538_v18 }
 0x51a   :  { %v535_v20 = vpop.xlane.xlu0 %534 }
 0x51b   :  { %v958_v21 = vpop.eup %957  ;;  %961 = vrsqrt.f32 %v542_v19  ;;  %v539_v23 = vmul.f32 0.125, %v535_v20 }
 0x51c   :  { %v960_v24 = vpop.eup %959  ;;  %v549_v25 = vmul.f32 %v958_v21, %v517_v57 }
 0x51d   :  { %v548_v26 = vmul.f32 %v960_v24, %v516_v58  ;;  %v543_v27 = vadd.f32 1e-05, %v539_v23  ;;  %v656_v58 = vld [vmem:[%s1274_s9 + $0x10] sm:$0xff] }
 0x51e   :  { %v560_v29 = vmul.f32 %v864_v22, %v549_v25  ;;  %919 = vmatprep.subr.mxu0 %v656_v58  ;;  %942 = vmatprep.subr.mxu1 %v656_v58 }
 0x51f   :  { %963 = vrsqrt.f32 %v543_v27  ;;  %v559_v30 = vmul.f32 %v864_v22, %v548_v26  ;;  %920 = vmatpush3.msra.mxu0 %v656_v58  ;;  %944 = vmatpush3.msra.mxu1 %v656_v58 }
 0x520   :  { %v571_v31 = vadd.f32 %v865_v28, %v560_v29 }
 0x521   :  { %v570_v32 = vadd.f32 %v865_v28, %v559_v30 }
 0x522   :  { %v575_v33 = vmax.f32 %v571_v31, 0.0 }
 0x523   :  { %v574_v34 = vmax.f32 %v570_v32, 0.0 }
 0x524   :  { %v583_v35 = vrot.slane %v575_v33, 7 }
 0x525   :  { %v962_v38 = vpop.eup %961  ;;  %v582_v39 = vrot.slane %v574_v34, 7 }
 0x526   :  { %v550_v41 = vmul.f32 %v962_v38, %v518_v2  ;;  %v596_v44 = vsel %vm52_vm0, %v583_v35, 0.0 }
 0x527   :  { %v584_v42 = vsel %vm52_vm0, %v582_v39, %v583_v35  ;;  %v594_v43 = vsel %vm52_vm0, 0.0, %v582_v39  ;;  %v605_v57 = vrot.slane %v596_v44, 1  ;;  %v627_v13 = vrot.slane %v596_v44, 2  ;;  %v866_v35 = vld [vmem:[%s1275_s10] ss:$0 sm:$0xff] }
 0x528   :  { %v561_v47 = vmul.f32 %v864_v22, %v550_v41  ;;  %v624_v48 = vrot.slane %v594_v43, 2  ;;  %v625_v49 = vrot.slane %v584_v42, 2  ;;  %v602_v50 = vrot.slane %v594_v43, 1 }
 0x529   :  { %v964_v51 = vpop.eup %963  ;;  %v603_v52 = vrot.slane %v584_v42, 1 }
 0x52a   :  { %v551_v53 = vmul.f32 %v964_v51, %v519_v7  ;;  %v626_v54 = vsel %vm96_vm1, %v624_v48, %v625_v49  ;;  %v572_v55 = vadd.f32 %v865_v28, %v561_v47  ;;  %v628_v16 = vsel %vm96_vm1, %v625_v49, %v627_v13 }
 0x52b   :  { %634 = vrot.lane.b32.xlu0 %v626_v54, %s976_s5  ;;  %v604_v56 = vsel %vm73_vm2, %v602_v50, %v603_v52  ;;  %v606_v63 = vsel %vm73_vm2, %v603_v52, %v605_v57 }
 0x52c   :  { %612 = vrot.lane.b32.xlu1 %v604_v56, %s973_s19  ;;  %v562_v59 = vmul.f32 %v864_v22, %v551_v53  ;;  %v576_v60 = vmax.f32 %v572_v55, 0.0 }
 0x52e   :  { %v573_v61 = vadd.f32 %v865_v28, %v562_v59  ;;  %v585_v62 = vrot.slane %v576_v60, 7 }
 0x530   :  { %614 = vrot.lane.b32.xlu1 %v606_v63, %s973_s19  ;;  %v577_v0 = vmax.f32 %v573_v61, 0.0  ;;  %v595_v3 = vsel %vm52_vm0, 0.0, %v585_v62 }
 0x531   :  { %v607_v9 = vrot.slane %v595_v3, 1  ;;  %v629_v14 = vrot.slane %v595_v3, 2 }
 0x532   :  { %v586_v2 = vrot.slane %v577_v0, 7 }
 0x534   :  { %v587_v4 = vsel %vm52_vm0, %v585_v62, %v586_v2  ;;  %v597_v5 = vsel %vm52_vm0, %v586_v2, 0.0 }
 0x535   :  { %v608_v7 = vrot.slane %v587_v4, 1  ;;  %v610_v8 = vrot.slane %v597_v5, 1  ;;  %v630_v12 = vrot.slane %v587_v4, 2  ;;  %v632_v17 = vrot.slane %v597_v5, 2 }
 0x537   :  { %v611_v10 = vsel %vm73_vm2, %v608_v7, %v610_v8  ;;  %v609_v11 = vsel %vm73_vm2, %v607_v9, %v608_v7  ;;  %v631_v15 = vsel %vm96_vm1, %v629_v14, %v630_v12  ;;  %v633_v18 = vsel %vm96_vm1, %v630_v12, %v632_v17 }
 0x538   :  { %618 = vrot.lane.b32.xlu1 %v611_v10, %s973_s19  ;;  %616 = vrot.lane.b32.xlu0 %v609_v11, %s973_s19 }
 0x53c   :  { %638 = vrot.lane.b32.xlu1 %v631_v15, %s976_s5  ;;  %636 = vrot.lane.b32.xlu0 %v628_v16, %s976_s5 }
 0x540   :  { %640 = vrot.lane.b32.xlu1 %v633_v18, %s976_s5 }
 0x59d   :  { %v635_v19 = vpop.permute.xlu0 %634 }
 0x59e   :  { %v613_v20 = vpop.permute.xlu1 %612 }
 0x59f   :  { %v646_v21 = vsel %vm124_vm7, %v594_v43, %v613_v20 }
 0x5a0   :  { %v650_v22 = vsel %vm387_vm9, %v646_v21, %v635_v19  ;;  %v871_v21 = vld [vmem:[%s1276_s11] ss:$0 sm:$0xff] }
 0x5a1   :  { %921 = vmatprep.mubr.msk.f32.mxu0 %vm402_vm10, %v650_v22 }
 0x5a2   :  { %v615_v23 = vpop.permute.xlu1 %614 }
 0x5a3   :  { %v647_v26 = vsel %vm124_vm7, %v584_v42, %v615_v23 }
 0x5aa   :  { %v619_v24 = vpop.permute.xlu1 %618  ;;  %v617_v25 = vpop.permute.xlu0 %616 }
 0x5ab   :  { %v648_v27 = vsel %vm124_vm7, %v595_v3, %v617_v25  ;;  %v649_v32 = vsel %vm124_vm7, %v587_v4, %v619_v24  ;;  %v872_v24 = vld [vmem:[%s1277_s12] ss:$0 sm:$0xff] }
 0x5ae   :  { %v639_v28 = vpop.permute.xlu1 %638  ;;  %v637_v29 = vpop.permute.xlu0 %636 }
 0x5af   :  { %v652_v30 = vsel %vm387_vm9, %v648_v27, %v639_v28  ;;  %v651_v31 = vsel %vm387_vm9, %v647_v26, %v637_v29 }
 0x5b0   :  { %922 = vmatmul.mubr.msk.f32.vlgmr.msra.gmra.mrb[4].mxu0 %vm402_vm10, %v651_v31  ;;  %924 = vmatprep.mubr.msk.f32.mxu1 %vm402_vm10, %v652_v30 }
 0x5b2   :  { %v641_v33 = vpop.permute.xlu1 %640 }
 0x5b3   :  { %v653_v34 = vsel %vm387_vm9, %v649_v32, %v641_v33 }
 0x5b4   :  { %925 = vmatmul.mubr.msk.f32.vlgmr.msra.gmra.mrb[4].mxu1 %vm402_vm10, %v653_v34 }
 0x683   :  { %v923_v36 = vpop.f32.mrb[4].mxu0 }
 0x684   :  { %v748_v37 = vadd.f32 %v923_v36, %v866_v35  ;;  %v742_v38 = vpop.f32.mrb[5].mxu0 }
 0x685   :  { %v743_v39 = vadd.f32 %v866_v35, %v742_v38 }
 0x686   :  { %v764_v40 = vsel %vm124_vm7, %v748_v37, 0.0 }
 0x687   :  { %v926_v41 = vpop.f32.mrb[4].mxu1  ;;  %765 = vadd.xlane.f32.xlu1 %v764_v40  ;;  %v761_v42 = vsel %vm124_vm7, %v743_v39, 0.0 }
 0x688   :  { %v752_v43 = vpop.f32.mrb[5].mxu1  ;;  %762 = vadd.xlane.f32.xlu0 %v761_v42  ;;  %v758_v47 = vadd.f32 %v926_v41, %v866_v35 }
 0x689   :  { %v753_v44 = vadd.f32 %v866_v35, %v752_v43 }
 0x68a   :  { %v770_v49 = vsel %vm124_vm7, %v758_v47, 0.0 }
 0x68b   :  { %v767_v48 = vsel %vm124_vm7, %v753_v44, 0.0 }
 0x68c   :  { %768 = vadd.xlane.f32.xlu0 %v767_v48 }
 0x690   :  { %771 = vadd.xlane.f32.xlu0 %v770_v49 }
 0x714   :  { %v766_v50 = vpop.xlane.xlu1 %765 }
 0x715   :  { %v774_v51 = vmul.f32 0.125, %v766_v50  ;;  %v763_v52 = vpop.xlane.xlu0 %762 }
 0x716   :  { %v773_v53 = vmul.f32 0.125, %v763_v52 }
 0x717   :  { %v778_v54 = vsub.f32 %v748_v37, %v774_v51 }
 0x718   :  { %v777_v55 = vsub.f32 %v743_v39, %v773_v53 }
 0x719   :  { %v769_v56 = vpop.xlane.xlu0 %768  ;;  %v782_v57 = vmul.f32 %v778_v54, %v778_v54 }
 0x71a   :  { %v775_v58 = vmul.f32 0.125, %v769_v56  ;;  %v781_v59 = vmul.f32 %v777_v55, %v777_v55 }
 0x71b   :  { %v788_v60 = vsel %vm124_vm7, %v782_v57, 0.0 }
 0x71c   :  { %v779_v61 = vsub.f32 %v753_v44, %v775_v58  ;;  %789 = vadd.xlane.f32.xlu0 %v788_v60  ;;  %v785_v62 = vsel %vm124_vm7, %v781_v59, 0.0 }
 0x71d   :  { %786 = vadd.xlane.f32.xlu1 %v785_v62  ;;  %v772_v63 = vpop.xlane.xlu0 %771 }
 0x71e   :  { %v776_v0 = vmul.f32 0.125, %v772_v63  ;;  %v783_v2 = vmul.f32 %v779_v61, %v779_v61 }
 0x720   :  { %v780_v3 = vsub.f32 %v758_v47, %v776_v0  ;;  %v791_v4 = vsel %vm124_vm7, %v783_v2, 0.0 }
 0x721   :  { %792 = vadd.xlane.f32.xlu1 %v791_v4 }
 0x722   :  { %v784_v5 = vmul.f32 %v780_v3, %v780_v3 }
 0x724   :  { %v794_v7 = vsel %vm124_vm7, %v784_v5, 0.0 }
 0x725   :  { %795 = vadd.xlane.f32.xlu0 %v794_v7 }
 0x7a9   :  { %v790_v8 = vpop.xlane.xlu0 %789 }
 0x7aa   :  { %v798_v9 = vmul.f32 0.125, %v790_v8  ;;  %v787_v10 = vpop.xlane.xlu1 %786 }
 0x7ab   :  { %v797_v11 = vmul.f32 0.125, %v787_v10 }
 0x7ac   :  { %v802_v12 = vadd.f32 1e-05, %v798_v9 }
 0x7ad   :  { %v801_v13 = vadd.f32 1e-05, %v797_v11 }
 0x7ae   :  { %965 = vrsqrt.f32 %v802_v12  ;;  %v793_v14 = vpop.xlane.xlu1 %792 }
 0x7af   :  { %967 = vrsqrt.f32 %v801_v13  ;;  %v799_v15 = vmul.f32 0.125, %v793_v14 }
 0x7b1   :  { %v803_v16 = vadd.f32 1e-05, %v799_v15 }
 0x7b2   :  { %v796_v17 = vpop.xlane.xlu0 %795 }
 0x7b3   :  { %969 = vrsqrt.f32 %v803_v16  ;;  %v800_v18 = vmul.f32 0.125, %v796_v17 }
 0x7b5   :  { %v804_v19 = vadd.f32 1e-05, %v800_v18 }
 0x7b7   :  { %971 = vrsqrt.f32 %v804_v19 }
 0x7b8   :  { %v966_v20 = vpop.eup %965 }
 0x7b9   :  { %v968_v22 = vpop.eup %967  ;;  %v810_v23 = vmul.f32 %v966_v20, %v778_v54 }
 0x7ba   :  { %v809_v25 = vmul.f32 %v968_v22, %v777_v55 }
 0x7bb   :  { %v821_v26 = vmul.f32 %v871_v21, %v810_v23 }
 0x7bc   :  { %v820_v27 = vmul.f32 %v871_v21, %v809_v25 }
 0x7bd   :  { %v970_v28 = vpop.eup %969  ;;  %v832_v29 = vadd.f32 %v872_v24, %v821_v26 }
 0x7be   :  { %v831_v30 = vadd.f32 %v872_v24, %v820_v27  ;;  %v811_v31 = vmul.f32 %v970_v28, %v779_v61 }
 0x7bf   :  { %v836_v32 = vadd.f32 %v832_v29, %v1119_v45 }
 0x7c0   :  { %v835_v33 = vadd.f32 %v831_v30, %v1121_v46  ;;  %v822_v34 = vmul.f32 %v871_v21, %v811_v31 }
 0x7c1   :  { %v972_v35 = vpop.eup %971  ;;  %v840_v36 = vmax.f32 %v836_v32, 0.0 }
 0x7c2   :  { %v839_v37 = vmax.f32 %v835_v33, 0.0  ;;  %v833_v38 = vadd.f32 %v872_v24, %v822_v34  ;;  %v812_v39 = vmul.f32 %v972_v35, %v780_v3 }
 0x7c3   :  { %844 = vst.msk [vmem:[%s1278_s13 + $0x8] sm:$0xff] %vm124_vm7, %v840_v36 }
 0x7c4   :  { %843 = vst.msk [vmem:[%s1278_s13] sm:$0xff] %vm124_vm7, %v839_v37  ;;  %v837_v45 = vadd.f32 %v833_v38, %v1135_v1  ;;  %v823_v40 = vmul.f32 %v871_v21, %v812_v39 }
 0x7c6   :  { %v841_v46 = vmax.f32 %v837_v45, 0.0  ;;  %v834_v41 = vadd.f32 %v872_v24, %v823_v40 }
 0x7c8   :  { %845 = vst.msk [vmem:[%s1278_s13 + $0x10] sm:$0xff] %vm124_vm7, %v841_v46  ;;  %v838_v42 = vadd.f32 %v834_v41, %v1140_v6 }
 0x7ca   :  { %v842_v43 = vmax.f32 %v838_v42, 0.0 }
 0x7cc   :  { %846 = vst.msk [vmem:[%s1278_s13 + $0x18] sm:$0xff] %vm124_vm7, %v842_v43 }

</bundles_post_ra>
